<compile_context>
chip_gen: v7x
topology: tpu7x:2x2x1
jax: 0.10.0
libtpu: 0.0.40
codegen_flags: <defaults>
</compile_context>

<pallas_src>
import functools

import jax
import jax.numpy as jnp
from jax.experimental import pallas as pl
from jax.experimental.pallas import tpu as pltpu


def _round_up(x, m):
    return ((x + m - 1) // m) * m


def _vmem_capacity_bytes():
    """Generation-aware VMEM capacity (falls back to the smallest, v7x 64 MiB)."""
    try:
        info = pltpu.get_tpu_info()
        cap = getattr(info, "vmem_capacity_bytes", None)
        if cap:
            return int(cap)
    except Exception:
        pass
    return 64 << 20


def _vmem_estimate_bytes(tn, c, in_dtype):
    """Working-set estimate: double-buffered inputs + in-kernel f32 temporaries."""
    itemsize = jnp.dtype(in_dtype).itemsize
    c_pad = _round_up(c, 128)
    tile_f32 = tn * c_pad * 4
    logits_bytes = 2 * tn * c_pad * itemsize   # double-buffered logits tile
    temps_bytes = 4 * tile_f32                 # x_f32, s, exp(s), iota/onehot
    targets_bytes = 2 * tn * 128 * 4           # (TN,1) int32 pads to 128 lanes
    out_bytes = 2 * 8 * 128 * 4                # resident (8,128) f32 accumulator
    headroom = 2 << 20
    return logits_bytes + temps_bytes + targets_bytes + out_bytes + headroom


def _focal_ce_partial_kernel(logits_ref, targets_ref, out_ref, *, n_true, tn):
    """Accumulates sum of per-example cross entropy into a resident (8,128) block."""
    i = pl.program_id(0)

    @pl.when(i == 0)
    def _init():
        out_ref[...] = jnp.zeros_like(out_ref)

    # Single full-tile convert to f32 (required for the exp/log path anyway).
    x = logits_ref[...].astype(jnp.float32)    # (TN, C) f32
    t = targets_ref[...]                       # (TN, 1) int32
    tn_blk, c = x.shape

    # Numerically stable shifted log-sum-exp; the row-max cancels against the
    # shifted target logit, so it never needs to be added back.
    m = jnp.max(x, axis=-1, keepdims=True)                         # (TN, 1)
    s = x - m                                                      # (TN, C) f32
    lse_shift = jnp.log(jnp.sum(jnp.exp(s), axis=-1, keepdims=True))

    # Gather the target-class (shifted) logit via a one-hot select on an iota.
    col = jax.lax.broadcasted_iota(jnp.int32, (tn_blk, c), 1)
    onehot = col == t                                              # (TN, C) bool
    tgt_shift = jnp.sum(jnp.where(onehot, s, 0.0), axis=-1, keepdims=True)

    per_example = lse_shift - tgt_shift                            # CE per row

    # Select-mask rows beyond the true batch size (last, possibly partial,
    # block).  Padded garbage may produce NaN/Inf in per_example; the select
    # (not arithmetic) masking discards it.
    row = i * tn + jax.lax.broadcasted_iota(jnp.int32, (tn_blk, 1), 0)
    valid = row < n_true
    partial = jnp.sum(jnp.where(valid, per_example, 0.0))          # scalar f32

    out_ref[...] += partial


def focal_bce_loss(logits, targets, alpha=1.0, gamma=2.0, reduction="mean"):
    """Pallas TPU implementation of FocalBCELoss.forward.

    logits:  [N, C] float array (f32 or bf16)
    targets: [N] integer class indices
    Returns a scalar; 'mean'/'sum'/'none' all reduce a scalar to itself,
    matching the PyTorch module.
    """
    n, c = logits.shape

    cap = _vmem_capacity_bytes()
    budget = (cap * 11) // 20                  # ~55% of per-core VMEM

    # Tile rows so each logits block is ~2 MiB of HBM traffic (multiple of 8,
    # capped at 8192), then shrink until the working set fits the budget.
    itemsize = jnp.dtype(logits.dtype).itemsize
    c_pad = _round_up(c, 128)
    tn = max(8, _round_up((2 << 20) // (c_pad * itemsize), 8))
    tn = min(tn, 8192, _round_up(n, 8))
    while _vmem_estimate_bytes(tn, c, logits.dtype) > budget and tn > 8:
        tn = max(8, _round_up(tn // 2, 8))

    num_blocks = pl.cdiv(n, tn)
    vmem_limit = int(min(max(_vmem_estimate_bytes(tn, c, logits.dtype), 16 << 20),
                         (cap * 9) // 10))

    t2 = targets.astype(jnp.int32).reshape(n, 1)

    kernel = functools.partial(_focal_ce_partial_kernel, n_true=n, tn=tn)

    acc = pl.pallas_call(
        kernel,
        out_shape=jax.ShapeDtypeStruct((8, 128), jnp.float32),
        grid=(num_blocks,),
        in_specs=[
            pl.BlockSpec((tn, c), lambda i: (i, 0)),   # logits tile (pipelined)
            pl.BlockSpec((tn, 1), lambda i: (i, 0)),   # targets column
        ],
        # Constant block index -> accumulator stays resident in VMEM across the
        # whole grid; written back to HBM exactly once.
        out_specs=pl.BlockSpec((8, 128), lambda i: (0, 0)),
        compiler_params=pltpu.CompilerParams(
            dimension_semantics=("arbitrary",),        # reduction axis
            vmem_limit_bytes=vmem_limit,
        ),
    )(logits, t2)

    # Focal transform on the batch-mean CE (matches the PyTorch module, which
    # applies it to the already-reduced CrossEntropyLoss scalar).
    total = acc[0, 0]
    bce = total / jnp.float32(n)
    pt = jnp.exp(-bce)
    one_minus_pt = 1.0 - pt
    g = float(gamma)
    if g.is_integer():
        focal_factor = one_minus_pt ** int(g)          # lax.integer_pow path
    else:
        focal_factor = one_minus_pt ** g
    f_loss = jnp.float32(alpha) * focal_factor * bce

    # 'mean' / 'sum' / 'none' over a scalar are all the identity.
    return f_loss


if __name__ == "__main__":
    key = jax.random.PRNGKey(0)
    k_logits, k_targets = jax.random.split(key)

    N, C = 8, 16
    logits = jax.random.normal(k_logits, (N, C), dtype=jnp.float32)
    targets = jax.random.randint(k_targets, (N,), 0, C, dtype=jnp.int32)

    loss = focal_bce_loss(logits, targets, alpha=1.0, gamma=2.0, reduction="mean")
    jax.block_until_ready(loss)

    # Pure-JAX reference (cross entropy -> focal transform).
    logp = jax.nn.log_softmax(logits, axis=-1)
    bce_ref = -jnp.mean(jnp.take_along_axis(logp, targets[:, None], axis=-1))
    pt_ref = jnp.exp(-bce_ref)
    ref = 1.0 * (1.0 - pt_ref) ** 2 * bce_ref
    assert jnp.allclose(loss, ref, atol=1e-5, rtol=1e-5), (loss, ref)

    print("KERNEL_OK")
</pallas_src>

<mosaic_0001>
module attributes {stable_mosaic.version = 11 : i64} {
  func.func @_focal_ce_partial_kernel(%arg0: i32, %arg1: memref<8x16xf32, #tpu.memory_space<vmem>>, %arg2: memref<8x1xi32, #tpu.memory_space<vmem>>, %arg3: memref<8x128xf32, #tpu.memory_space<vmem>>) attributes {dimension_semantics = [#tpu.dimension_semantics<arbitrary>], iteration_bounds = array<i64: 1>, scalar_prefetch = 0 : i64, scratch_operands = 0 : i64, tpu.core_type = #tpu.core_type<tc>, window_params = [{transform_indices = @transform_0, window_bounds = array<i64: 8, 16>}, {transform_indices = @transform_1, window_bounds = array<i64: 8, 1>}, {pipeline_mode = #tpu.pipeline_mode<synchronous>, transform_indices = @transform_2, window_bounds = array<i64: 8, 128>}]} {
    %c0_i32 = arith.constant 0 : i32
    %0 = arith.cmpi eq, %arg0, %c0_i32 : i32
    %1 = arith.extui %0 : i1 to i32
    %c0_i32_0 = arith.constant 0 : i32
    %2 = arith.cmpi ne, %1, %c0_i32_0 : i32
    scf.if %2 {
      %cst_14 = arith.constant 0.000000e+00 : f32
      %37 = vector.broadcast %cst_14 : f32 to vector<8x128xf32>
      %c0_15 = arith.constant 0 : index
      %c0_16 = arith.constant 0 : index
      %38 = vector.load %arg3[%c0_15, %c0_16] : memref<8x128xf32, #tpu.memory_space<vmem>>, vector<8x128xf32>
      tpu.vector_store %arg3[%c0_15, %c0_16], %37 {strides = array<i32>} : memref<8x128xf32, #tpu.memory_space<vmem>>, vector<8x128xf32>,
    } else {
    }
    %c0 = arith.constant 0 : index
    %c0_1 = arith.constant 0 : index
    %3 = vector.load %arg1[%c0, %c0_1] : memref<8x16xf32, #tpu.memory_space<vmem>>, vector<8x16xf32>
    %c0_2 = arith.constant 0 : index
    %c0_3 = arith.constant 0 : index
    %4 = vector.load %arg2[%c0_2, %c0_3] : memref<8x1xi32, #tpu.memory_space<vmem>>, vector<8x1xi32>
    %cst = arith.constant dense<0xFF800000> : vector<8xf32>
    %5 = vector.multi_reduction <maximumf>, %3, %cst [1] : vector<8x16xf32> to vector<8xf32>
    %6 = vector.shape_cast %5 : vector<8xf32> to vector<8x1xf32>
    %7 = vector.broadcast %6 : vector<8x1xf32> to vector<8x16xf32>
    %8 = arith.subf %3, %7 : vector<8x16xf32>
    %9 = math.exp %8 : vector<8x16xf32>
    %cst_4 = arith.constant dense<0.000000e+00> : vector<8xf32>
    %10 = vector.multi_reduction <add>, %9, %cst_4 [1] : vector<8x16xf32> to vector<8xf32>
    %11 = vector.shape_cast %10 : vector<8xf32> to vector<8x1xf32>
    %12 = math.log %11 : vector<8x1xf32>
    %13 = tpu.iota {dimensions = array<i32: 1>} : vector<8x16xi32>
    %14 = vector.broadcast %4 : vector<8x1xi32> to vector<8x16xi32>
    %15 = arith.cmpi eq, %13, %14 : vector<8x16xi32>
    %cst_5 = arith.constant 0.000000e+00 : f32
    %16 = vector.broadcast %cst_5 : f32 to vector<8x16xf32>
    %17 = arith.select %15, %8, %16 : vector<8x16xi1>, vector<8x16xf32>
    %cst_6 = arith.constant dense<0.000000e+00> : vector<8xf32>
    %18 = vector.multi_reduction <add>, %17, %cst_6 [1] : vector<8x16xf32> to vector<8xf32>
    %19 = vector.shape_cast %18 : vector<8xf32> to vector<8x1xf32>
    %20 = arith.subf %12, %19 : vector<8x1xf32>
    %c8_i32 = arith.constant 8 : i32
    %21 = arith.muli %arg0, %c8_i32 : i32
    %22 = tpu.iota {dimensions = array<i32: 0>} : vector<8x1xi32>
    %23 = vector.broadcast %21 : i32 to vector<8x1xi32>
    %24 = arith.addi %23, %22 : vector<8x1xi32>
    %c8_i32_7 = arith.constant 8 : i32
    %25 = vector.broadcast %c8_i32_7 : i32 to vector<8x1xi32>
    %26 = arith.cmpi slt, %24, %25 : vector<8x1xi32>
    %cst_8 = arith.constant 0.000000e+00 : f32
    %27 = vector.broadcast %cst_8 : f32 to vector<8x1xf32>
    %28 = arith.select %26, %20, %27 : vector<8x1xi1>, vector<8x1xf32>
    %29 = vector.shape_cast %28 : vector<8x1xf32> to vector<1x8x1xf32>
    %cst_9 = arith.constant dense<0.000000e+00> : vector<1xf32>
    %30 = vector.multi_reduction <add>, %29, %cst_9 [1, 2] : vector<1x8x1xf32> to vector<1xf32>
    %31 = vector.shape_cast %30 : vector<1xf32> to vector<1x1x1xf32>
    %32 = vector.extract %31[0, 0, 0] : f32 from vector<1x1x1xf32>
    %c0_10 = arith.constant 0 : index
    %c0_11 = arith.constant 0 : index
    %33 = vector.load %arg3[%c0_10, %c0_11] : memref<8x128xf32, #tpu.memory_space<vmem>>, vector<8x128xf32>
    %34 = vector.broadcast %32 : f32 to vector<8x128xf32>
    %35 = arith.addf %33, %34 : vector<8x128xf32>
    %c0_12 = arith.constant 0 : index
    %c0_13 = arith.constant 0 : index
    %36 = vector.load %arg3[%c0_12, %c0_13] : memref<8x128xf32, #tpu.memory_space<vmem>>, vector<8x128xf32>
    tpu.vector_store %arg3[%c0_12, %c0_13], %35 {strides = array<i32>} : memref<8x128xf32, #tpu.memory_space<vmem>>, vector<8x128xf32>,
    return
  }
  func.func @transform_0(%arg0: i32) -> (i32, i32) {
    %c0_i32 = arith.constant 0 : i32
    %c0_i32_0 = arith.constant 0 : i32
    return %arg0, %c0_i32 : i32, i32
  }
  func.func @transform_1(%arg0: i32) -> (i32, i32) {
    %c0_i32 = arith.constant 0 : i32
    %c0_i32_0 = arith.constant 0 : i32
    return %arg0, %c0_i32 : i32, i32
  }
  func.func @transform_2(%arg0: i32) -> (i32, i32) {
    %c0_i32 = arith.constant 0 : i32
    %c0_i32_0 = arith.constant 0 : i32
    %c0_i32_1 = arith.constant 0 : i32
    return %c0_i32, %c0_i32_0 : i32, i32
  }
}

</mosaic_0001>

<bundles_post_ra>
// kernel: tpu_custom_call.1
= control target key start
LH: loop header
LB: loop body
LE: loop exit
PB: predicated region body
PF: predicated region fallthrough
CT: control target
= control target key end

     0   :  { %vm19_vm0 = vcmask 130048   ;;  %s150_s0 = inlined_call_operand.vmem [shape: f32[8,16], index: 0, kind: input, shape index: {}]   ;;  %s151_s1 = inlined_call_operand.vmem [shape: s32[8,1], index: 1, kind: input, shape index: {}]   ;;  %s152_s2 = inlined_call_operand.hbm [shape: f32[8,128], index: 2, kind: output, shape index: {}]  }
   0x1   :  { %v17_v0 = vld [vmem:[%s150_s0] sm:$0xff] }
   0x2   :  { %7 = vsyncpa [#allocation3], 0  ;;  %v20_v1 = vsel %vm19_vm0, %v17_v0, -inf  ;;  %v112_v2 = vmov 0   ;;  %v18_v3 = vld [vmem:[%s151_s1] sm:$0xff]  ;;  %v31_v7 = vlaneseq  ;;  %vm49_vm2 = vcmask 7168  }
   0x3   :  { %83 = vset.pattern.permute.xlu0 %v112_v2  ;;  %s113_s0 = smov [#allocation2]  }
   0x4   :  { %21 = vmax.xlane.f32.xlu0 %v20_v1  ;;  %v32_v8 = vand.u32 127, %v31_v7  ;;  %s70_s1 = sshll.u32 %s113_s0, 4  ;;  %s71_s1 = int_to_ptr.vmem [resolvable:$true] %s70_s1 }
   0x5   :  { %s88_s14 = scalar_lea.vmem %s71_s1, 128  ;;  %p93_p1 = scmp.lt.s32.totalorder %s71_s1, %s71_s1 }
   0x6   :  { %p89_p0 = scmp.ne.s32.totalorder %s71_s1, %s88_s14  ;;  %p94_p2 = scmp.lt.s32.totalorder %s88_s14, %s88_s14 }
   0x8   :  { %p95_p3 = por %p94_p2, %p93_p1 }
   0xa   :  { %p96_p4 = pnand %p95_p3, %p89_p0 }
  0x1a   :  { %34 = vperm.xlu0 %83, %v18_v3  }
  0x91   :  { %v22_v4 = vpop.xlane.xlu0 %21 }
  0x92   :  { %v23_v5 = vsub.f32 %v17_v0, %v22_v4 }
  0x94   :  { %v24_v6 = vmul.f32 1.442695, %v23_v5 }
  0x96   :  { %84 = vpow2.f32 %v24_v6 }
  0x99   :  { %v35_v9 = vpop.permute.xlu0 %34 }
  0x9a   :  { %vm36_vm1 = vcmp.eq.s32.totalorder %v32_v8, %v35_v9 }
  0x9b   :  { %v37_v12 = vsel %vm36_vm1, %v23_v5, 0.0 }
  0x9c   :  { %v38_v13 = vsel %vm19_vm0, %v37_v12, 0.0 }
  0xa0   :  { %v85_v10 = vpop.eup %84 }
  0xa1   :  { %v26_v11 = vsel %vm19_vm0, %v85_v10, 0.0 }
  0xa2   :  { %27 = vadd.xlane.f32.xlu1 %v26_v11 }
  0xa6   :  { %39 = vadd.xlane.f32.xlu1 %v38_v13 }
 0x12f   :  { %v28_v14 = vpop.xlane.xlu1 %27 }
 0x130   :  { %86 = vlog2.f32 %v28_v14 }
 0x133   :  { %v40_v17 = vpop.xlane.xlu1 %39 }
 0x13a   :  { %v87_v15 = vpop.eup %86 }
 0x13b   :  { %v30_v16 = vmul.f32 0.6931472, %v87_v15 }
 0x13d   :  { %v41_v18 = vsub.f32 %v30_v16, %v40_v17 }
 0x13f   :  { %v50_v19 = vsel %vm49_vm2, %v41_v18, 0.0 }
 0x140   :  { %51 = vadd.xlane.f32.xlu1 %v50_v19 }
 0x1cd   :  { %v52_v20 = vpop.xlane.xlu1 %51 }
 0x1ce   :  { %v53_v21 = vrot.slane %v52_v20, 4 }
 0x1d0   :  { %v54_v22 = vadd.f32 %v53_v21, %v52_v20 }
 0x1d2   :  { %v55_v23 = vrot.slane %v54_v22, 2 }
 0x1d4   :  { %v56_v24 = vadd.f32 %v55_v23, %v54_v22 }
 0x1d6   :  { %v57_v25 = vrot.slane %v56_v24, 1 }
 0x1d8   :  { %v58_v26 = vadd.f32 %v57_v25, %v56_v24 }
 0x1da   :  { %78 = vpush %v58_v26 }
 0x20b   :  { %s79_s13 = spop %78 }
 0x20c   :  { %v61_v27 = vstv %s79_s13 }
 0x20d   :  { %63 = vst [vmem:[#allocation2] sm:$0xff] %v61_v27 }
 0x20e   :  { %99 = shalt.err (!%p96_p4)
}
 0x20f   :  { %s100_s17 = scalar_lea.hbm %s152_s2, 128 }
 0x210   :  { %p101_p5 = scmp.ne.s32.totalorder %s152_s2, %s100_s17  ;;  %p104_p6 = scmp.lt.u32.totalorder %s100_s17, %s152_s2 }
 0x212   :  { %p106_p7 = pnand %p104_p6, %p101_p5 }
 0x214   :  { %109 = shalt.err (!%p106_p7)
}
 0x215   :  { %73 = dma.vmem_to_hbm [thread:$0]  %s71_s1, 128, %s152_s2, [#allocation3]  }
 0x216   :  { %110 = dma.done.wait [#allocation3], 128  }
 0x217   :  { %111 = vsyncadd [#allocation3], 4294967168 }
 0x218   :  { %77 = vsyncpa [#allocation3], 1 }

</bundles_post_ra>
